<compile_context>
chip_gen: v7x
topology: tpu7x:2x2x1
jax: 0.10.0
libtpu: 0.0.40
codegen_flags: <defaults>
</compile_context>

<pallas_src>
import jax
import jax.numpy as jnp
from jax.experimental import pallas as pl
from jax.experimental.pallas import tpu as pltpu


def _round_up(a, b):
    return (a + b - 1) // b * b


def _physical_vmem_bytes():
    """Per-TensorCore VMEM capacity; conservative (v7x-class) fallback."""
    try:
        cap = getattr(pltpu.get_tpu_info(), "vmem_capacity_bytes", None)
        if cap:
            return int(cap)
    except Exception:
        pass
    return 64 * 1024 * 1024


def _cnad_kernel(x_ref, w1_ref, b1_ref, w2_ref, b2_ref, o_ref):
    # fc1: (block_n, Dp) @ (Dp, Dp), bf16 x bf16 on the MXU, f32 accumulation.
    xb = x_ref[...].astype(jnp.bfloat16)            # no-op if x is already bf16
    h = jnp.dot(xb, w1_ref[...], preferred_element_type=jnp.float32)
    h = jnp.maximum(h + b1_ref[...], 0.0)           # bias + ReLU in f32 (VPU)

    # fc2: (block_n, Dp) @ (Dp, 2), also bf16 on the MXU (f32 matmuls are
    # MXU-emulated at ~3-6x cost); accumulate and add the bias in f32.
    logits = jnp.dot(h.astype(jnp.bfloat16), w2_ref[...],
                     preferred_element_type=jnp.float32)
    logits = logits + b2_ref[...]

    # Numerically stable softmax over the class axis (dim=1 in torch).
    m = jnp.max(logits, axis=-1, keepdims=True)
    e = jnp.exp(logits - m)
    s = jnp.sum(e, axis=-1, keepdims=True)
    o_ref[...] = e / s                               # exact normalization


def cnad_classifier_forward(x, w1, b1, w2, b2, *, block_n=None):
    """x: (N, D) f32/bf16; w1: (D, D); b1: (D,)/(1, D); w2: (D, 2); b2: (2,)/(1, 2)."""
    x = jnp.asarray(x)
    if x.dtype != jnp.bfloat16:                      # accept bf16 as-is, else f32
        x = x.astype(jnp.float32)
    n, d = x.shape
    n_cls = w2.shape[-1]

    # Feature dim padded to a lane multiple (128). Batch dim is never padded:
    # Pallas masks the ragged last block, avoiding an extra HBM pass over x.
    dp = _round_up(d, 128)
    if dp != d:
        x = jnp.pad(x, ((0, 0), (0, dp - d)))        # only copies when needed

    # Zero padding keeps the math exact for real features: padded w1 cols and
    # b1 entries are 0 -> relu(0) = 0 -> padded w2 rows contribute nothing.
    w1_p = jnp.asarray(w1, jnp.float32)
    w2_p = jnp.asarray(w2, jnp.float32)
    b1_p = jnp.asarray(b1, jnp.float32).reshape(1, -1)
    if dp != d:
        w1_p = jnp.pad(w1_p, ((0, dp - d), (0, dp - d)))
        w2_p = jnp.pad(w2_p, ((0, dp - d), (0, 0)))
        b1_p = jnp.pad(b1_p, ((0, 0), (0, dp - d)))
    w1_p = w1_p.astype(jnp.bfloat16)                 # bf16 residents: half VMEM/DMA
    w2_p = w2_p.astype(jnp.bfloat16)
    b2_p = jnp.asarray(b2, jnp.float32).reshape(1, -1)

    x_item = jnp.dtype(x.dtype).itemsize
    row_align = 16 if x.dtype == jnp.bfloat16 else 8

    if block_n is None:
        block_n = 512
        # On multi-TensorCore parts (v7x) a single-step grid idles a core:
        # once the batch is big enough, cap block_n so the "parallel" batch
        # axis has >= 2 (~4) steps to shard across cores.
        if n > 256:
            block_n = min(block_n, max(128, _round_up(pl.cdiv(n, 4), row_align)))
    block_n = max(row_align,
                  _round_up(min(block_n, _round_up(n, row_align)), row_align))

    def _vmem_bytes(bn):
        # Streamed tiles are double-buffered by the pipeline; residents are a
        # single copy (memory_space=VMEM); plus the implicit in-kernel
        # intermediates (xb, h, bf16 h, logit/softmax temps), with (8,128)
        # tile padding on the narrow arrays.
        return (2 * bn * dp * x_item          # x tile (pipelined)
                + bn * dp * 2                 # xb (bf16 copy of the x tile)
                + bn * dp * 4                 # h (f32)
                + bn * dp * 2                 # h cast to bf16 for fc2
                + 3 * bn * 128 * 4            # logits / exp / sum temps (lane-padded)
                + 2 * bn * 128 * 4            # out tile (pipelined, lane-padded)
                + dp * dp * 2                 # w1 resident (bf16, single copy)
                + 8 * dp * 4                  # b1 (sublane-padded)
                + dp * 128 * 2                # w2 (bf16, lanes padded 2 -> 128)
                + 8 * 128 * 4)                # b2

    # Generation-aware budget: ~100 MiB of the 128 MiB on v5e/v6e, ~52 MiB of
    # the 64 MiB per-TensorCore on v7x, leaving headroom for compiler scratch.
    phys = _physical_vmem_bytes()
    if phys >= 100 * 1024 * 1024:
        soft_cap, hard_cap = 100 * 1024 * 1024, 112 * 1024 * 1024
    else:
        soft_cap, hard_cap = 52 * 1024 * 1024, 58 * 1024 * 1024

    while block_n > row_align and _vmem_bytes(block_n) > soft_cap:
        block_n = max(row_align, _round_up(block_n // 2, row_align))
    # TODO(synk): if bf16 w1 alone approaches soft_cap (very large D), switch
    # to a K-tiled grid axis ("arbitrary") with an f32 VMEM accumulator.

    grid = (pl.cdiv(n, block_n),)
    vmem_limit = int(min(max(_vmem_bytes(block_n) + (4 << 20), 32 * 1024 * 1024),
                         hard_cap))

    cost = pl.CostEstimate(
        flops=2 * n * dp * dp + 2 * n * dp * n_cls,
        transcendentals=n * n_cls,
        bytes_accessed=(n * dp * x_item + dp * dp * 2 + dp * 4
                        + dp * n_cls * 2 + n_cls * 4 + n * n_cls * 4),
    )

    return pl.pallas_call(
        _cnad_kernel,
        out_shape=jax.ShapeDtypeStruct((n, n_cls), jnp.float32),
        grid_spec=pltpu.PrefetchScalarGridSpec(
            num_scalar_prefetch=0,
            grid=grid,
            in_specs=[
                # x: streamed / pipelined over the batch grid.
                pl.BlockSpec((block_n, dp), lambda i: (i, 0)),
                # Grid-invariant params: whole-array, single resident VMEM
                # copy each (no double-buffered second copy of w1).
                pl.BlockSpec(memory_space=pltpu.MemorySpace.VMEM),   # w1 (bf16)
                pl.BlockSpec(memory_space=pltpu.MemorySpace.VMEM),   # b1 (f32)
                pl.BlockSpec(memory_space=pltpu.MemorySpace.VMEM),   # w2 (bf16)
                pl.BlockSpec(memory_space=pltpu.MemorySpace.VMEM),   # b2 (f32)
            ],
            out_specs=pl.BlockSpec((block_n, n_cls), lambda i: (i, 0)),
        ),
        compiler_params=pltpu.CompilerParams(
            dimension_semantics=("parallel",),
            vmem_limit_bytes=vmem_limit,
        ),
        cost_estimate=cost,
    )(x, w1_p, b1_p, w2_p, b2_p)


def reference_forward(x, w1, b1, w2, b2):
    h = jnp.maximum(x @ w1 + jnp.reshape(b1, (1, -1)), 0.0)
    logits = h @ w2 + jnp.reshape(b2, (1, -1))
    return jax.nn.softmax(logits, axis=1)


if __name__ == "__main__":
    key = jax.random.PRNGKey(0)
    ks = jax.random.split(key, 15)
    n_classes = 2

    # --- Test 1: module-sized toy problem (batch=8, input_dim=32) -----------
    batch, input_dim = 8, 32
    bound1 = 1.0 / (input_dim ** 0.5)
    x = jax.random.normal(ks[0], (batch, input_dim), dtype=jnp.float32)
    w1 = jax.random.uniform(ks[1], (input_dim, input_dim), jnp.float32, -bound1, bound1)
    b1 = jax.random.uniform(ks[2], (1, input_dim), jnp.float32, -bound1, bound1)
    w2 = jax.random.uniform(ks[3], (input_dim, n_classes), jnp.float32, -bound1, bound1)
    b2 = jax.random.uniform(ks[4], (1, n_classes), jnp.float32, -bound1, bound1)

    out = jax.block_until_ready(cnad_classifier_forward(x, w1, b1, w2, b2))
    ref = reference_forward(x, w1, b1, w2, b2)
    assert out.shape == (batch, n_classes)
    assert jnp.allclose(out, ref, atol=1e-2, rtol=1e-2), "mismatch vs reference (test 1)"
    assert jnp.allclose(jnp.sum(out, axis=1), 1.0, atol=5e-3), "rows must sum to 1 (test 1)"

    # --- Test 2: multi-step grid + ragged last block + D padding ------------
    n2, d2 = 200, 96
    bound2 = 1.0 / (d2 ** 0.5)
    x2 = jax.random.normal(ks[5], (n2, d2), dtype=jnp.float32)
    w12 = jax.random.uniform(ks[6], (d2, d2), jnp.float32, -bound2, bound2)
    b12 = jax.random.uniform(ks[7], (1, d2), jnp.float32, -bound2, bound2)
    w22 = jax.random.uniform(ks[8], (d2, n_classes), jnp.float32, -bound2, bound2)
    b22 = jax.random.uniform(ks[9], (1, n_classes), jnp.float32, -bound2, bound2)

    out2 = jax.block_until_ready(
        cnad_classifier_forward(x2, w12, b12, w22, b22, block_n=64))
    ref2 = reference_forward(x2, w12, b12, w22, b22)
    assert out2.shape == (n2, n_classes)
    assert jnp.allclose(out2, ref2, atol=1e-2, rtol=1e-2), "mismatch vs reference (test 2)"
    assert jnp.allclose(jnp.sum(out2, axis=1), 1.0, atol=5e-3), "rows must sum to 1 (test 2)"

    # --- Test 3: bf16 x, D already lane-aligned (no pad), ragged last block --
    n3, d3 = 300, 256
    bound3 = 1.0 / (d3 ** 0.5)
    x3 = jax.random.normal(ks[10], (n3, d3), dtype=jnp.float32).astype(jnp.bfloat16)
    w13 = jax.random.uniform(ks[11], (d3, d3), jnp.float32, -bound3, bound3)
    b13 = jax.random.uniform(ks[12], (1, d3), jnp.float32, -bound3, bound3)
    w23 = jax.random.uniform(ks[13], (d3, n_classes), jnp.float32, -bound3, bound3)
    b23 = jax.random.uniform(ks[14], (1, n_classes), jnp.float32, -bound3, bound3)

    out3 = jax.block_until_ready(cnad_classifier_forward(x3, w13, b13, w23, b23))
    ref3 = reference_forward(x3.astype(jnp.float32), w13, b13, w23, b23)
    assert out3.shape == (n3, n_classes)
    assert jnp.allclose(out3, ref3, atol=1e-2, rtol=1e-2), "mismatch vs reference (test 3)"
    assert jnp.allclose(jnp.sum(out3, axis=1), 1.0, atol=5e-3), "rows must sum to 1 (test 3)"

    print("KERNEL_OK")
</pallas_src>

<mosaic_0001>
module attributes {stable_mosaic.version = 11 : i64} {
  func.func @_cnad_kernel(%arg0: i32, %arg1: memref<8x128xf32, #tpu.memory_space<vmem>>, %arg2: memref<128x128xbf16, #tpu.memory_space<vmem>>, %arg3: memref<1x128xf32, #tpu.memory_space<vmem>>, %arg4: memref<128x2xbf16, #tpu.memory_space<vmem>>, %arg5: memref<1x2xf32, #tpu.memory_space<vmem>>, %arg6: memref<8x2xf32, #tpu.memory_space<vmem>>) attributes {dimension_semantics = [#tpu.dimension_semantics<parallel>], iteration_bounds = array<i64: 1>, scalar_prefetch = 0 : i64, scratch_operands = 0 : i64, tpu.core_type = #tpu.core_type<tc>, window_params = [{transform_indices = @transform_0, window_bounds = array<i64: 8, 128>}, {pipeline_mode = #tpu.pipeline_mode<synchronous>, transform_indices = @transform_1, window_bounds = array<i64: 128, 128>}, {pipeline_mode = #tpu.pipeline_mode<synchronous>, transform_indices = @transform_2, window_bounds = array<i64: 1, 128>}, {pipeline_mode = #tpu.pipeline_mode<synchronous>, transform_indices = @transform_3, window_bounds = array<i64: 128, 2>}, {pipeline_mode = #tpu.pipeline_mode<synchronous>, transform_indices = @transform_4, window_bounds = array<i64: 1, 2>}, {transform_indices = @transform_5, window_bounds = array<i64: 8, 2>}]} {
    %c0 = arith.constant 0 : index
    %c0_0 = arith.constant 0 : index
    %0 = vector.load %arg1[%c0, %c0_0] : memref<8x128xf32, #tpu.memory_space<vmem>>, vector<8x128xf32>
    %1 = arith.truncf %0 : vector<8x128xf32> to vector<8x128xbf16>
    %c0_1 = arith.constant 0 : index
    %c0_2 = arith.constant 0 : index
    %2 = vector.load %arg2[%c0_1, %c0_2] : memref<128x128xbf16, #tpu.memory_space<vmem>>, vector<128x128xbf16>
    %cst = arith.constant dense<0.000000e+00> : vector<8x128xf32>
    %3 = tpu.matmul %1, %2, %cst {dimension_numbers = #tpu.dot_dimension_numbers<[1], [0], [0], [1], [0, 0, 1, 1], [], []>} : vector<8x128xbf16>, vector<128x128xbf16>, vector<8x128xf32> -> vector<8x128xf32>
    %c0_3 = arith.constant 0 : index
    %c0_4 = arith.constant 0 : index
    %4 = vector.load %arg3[%c0_3, %c0_4] : memref<1x128xf32, #tpu.memory_space<vmem>>, vector<1x128xf32>
    %5 = vector.broadcast %4 : vector<1x128xf32> to vector<8x128xf32>
    %6 = arith.addf %3, %5 : vector<8x128xf32>
    %cst_5 = arith.constant 0.000000e+00 : f32
    %7 = vector.broadcast %cst_5 : f32 to vector<8x128xf32>
    %8 = arith.maximumf %6, %7 : vector<8x128xf32>
    %9 = arith.truncf %8 : vector<8x128xf32> to vector<8x128xbf16>
    %c0_6 = arith.constant 0 : index
    %c0_7 = arith.constant 0 : index
    %10 = vector.load %arg4[%c0_6, %c0_7] : memref<128x2xbf16, #tpu.memory_space<vmem>>, vector<128x2xbf16>
    %cst_8 = arith.constant dense<0.000000e+00> : vector<8x2xf32>
    %11 = tpu.matmul %9, %10, %cst_8 {dimension_numbers = #tpu.dot_dimension_numbers<[1], [0], [0], [1], [0, 0, 1, 1], [], []>} : vector<8x128xbf16>, vector<128x2xbf16>, vector<8x2xf32> -> vector<8x2xf32>
    %c0_9 = arith.constant 0 : index
    %c0_10 = arith.constant 0 : index
    %12 = vector.load %arg5[%c0_9, %c0_10] : memref<1x2xf32, #tpu.memory_space<vmem>>, vector<1x2xf32>
    %13 = vector.broadcast %12 : vector<1x2xf32> to vector<8x2xf32>
    %14 = arith.addf %11, %13 : vector<8x2xf32>
    %cst_11 = arith.constant dense<0xFF800000> : vector<8xf32>
    %15 = vector.multi_reduction <maximumf>, %14, %cst_11 [1] : vector<8x2xf32> to vector<8xf32>
    %16 = vector.shape_cast %15 : vector<8xf32> to vector<8x1xf32>
    %17 = vector.broadcast %16 : vector<8x1xf32> to vector<8x2xf32>
    %18 = arith.subf %14, %17 : vector<8x2xf32>
    %19 = math.exp %18 : vector<8x2xf32>
    %cst_12 = arith.constant dense<0.000000e+00> : vector<8xf32>
    %20 = vector.multi_reduction <add>, %19, %cst_12 [1] : vector<8x2xf32> to vector<8xf32>
    %21 = vector.shape_cast %20 : vector<8xf32> to vector<8x1xf32>
    %22 = vector.broadcast %21 : vector<8x1xf32> to vector<8x2xf32>
    %23 = arith.divf %19, %22 : vector<8x2xf32>
    %c0_13 = arith.constant 0 : index
    %c0_14 = arith.constant 0 : index
    %24 = vector.load %arg6[%c0_13, %c0_14] : memref<8x2xf32, #tpu.memory_space<vmem>>, vector<8x2xf32>
    tpu.vector_store %arg6[%c0_13, %c0_14], %23 {strides = array<i32>} : memref<8x2xf32, #tpu.memory_space<vmem>>, vector<8x2xf32>,
    return
  }
  func.func @transform_0(%arg0: i32) -> (i32, i32) {
    %c0_i32 = arith.constant 0 : i32
    %c0_i32_0 = arith.constant 0 : i32
    return %arg0, %c0_i32 : i32, i32
  }
  func.func @transform_1(%arg0: i32) -> (i32, i32) {
    %c0_i32 = arith.constant 0 : i32
    %c0_i32_0 = arith.constant 0 : i32
    %c0_i32_1 = arith.constant 0 : i32
    return %c0_i32, %c0_i32_0 : i32, i32
  }
  func.func @transform_2(%arg0: i32) -> (i32, i32) {
    %c0_i32 = arith.constant 0 : i32
    %c0_i32_0 = arith.constant 0 : i32
    %c0_i32_1 = arith.constant 0 : i32
    return %c0_i32, %c0_i32_0 : i32, i32
  }
  func.func @transform_3(%arg0: i32) -> (i32, i32) {
    %c0_i32 = arith.constant 0 : i32
    %c0_i32_0 = arith.constant 0 : i32
    %c0_i32_1 = arith.constant 0 : i32
    return %c0_i32, %c0_i32_0 : i32, i32
  }
  func.func @transform_4(%arg0: i32) -> (i32, i32) {
    %c0_i32 = arith.constant 0 : i32
    %c0_i32_0 = arith.constant 0 : i32
    %c0_i32_1 = arith.constant 0 : i32
    return %c0_i32, %c0_i32_0 : i32, i32
  }
  func.func @transform_5(%arg0: i32) -> (i32, i32) {
    %c0_i32 = arith.constant 0 : i32
    %c0_i32_0 = arith.constant 0 : i32
    return %arg0, %c0_i32 : i32, i32
  }
}

</mosaic_0001>

<bundles_post_ra>
// kernel: tpu_custom_call.1
= control target key start
LH: loop header
LB: loop body
LE: loop exit
PB: predicated region body
PF: predicated region fallthrough
CT: control target
= control target key end

     0   :  { %10 = vsyncpa [#allocation3], 0  ;;  %s400_s18 = smov [#allocation2]   ;;  %s505_s0 = inlined_call_operand.hbm [shape: f32[8,128], index: 0, kind: input, shape index: {}]   ;;  %s506_s1 = inlined_call_operand.vmem [shape: bf16[128,128], index: 1, kind: input, shape index: {}]   ;;  %s507_s2 = inlined_call_operand.vmem [shape: f32[1,128], index: 2, kind: input, shape index: {}]   ;;  %s508_s3 = inlined_call_operand.vmem [shape: bf16[128,2], index: 3, kind: input, shape index: {}]   ;;  %s509_s4 = inlined_call_operand.vmem [shape: f32[1,2], index: 4, kind: input, shape index: {}]   ;;  %s510_s5 = inlined_call_operand.vmem [shape: f32[8,2], index: 5, kind: output, shape index: {}]  }
   0x1   :  { %s17_s19 = sshll.u32 %s400_s18, 4  ;;  %s376_s22 = scalar_lea.hbm %s505_s0, 128  ;;  %s18_s19 = int_to_ptr.vmem [resolvable:$true] %s17_s19 }
   0x2   :  { %p377_p0 = scmp.ne.s32.totalorder %s505_s0, %s376_s22  ;;  %p380_p1 = scmp.lt.u32.totalorder %s376_s22, %s505_s0 }
   0x4   :  { %p382_p2 = pnand %p380_p1, %p377_p0 }
   0x6   :  { %385 = shalt.err (!%p382_p2)
}
   0x7   :  { %s386_s27 = scalar_lea.vmem %s18_s19, 128  ;;  %p391_p4 = scmp.lt.s32.totalorder %s18_s19, %s18_s19 }
   0x8   :  { %p387_p3 = scmp.ne.s32.totalorder %s18_s19, %s386_s27  ;;  %p392_p5 = scmp.lt.s32.totalorder %s386_s27, %s386_s27 }
   0xa   :  { %p393_p6 = por %p392_p5, %p391_p4 }
   0xc   :  { %p394_p7 = pnand %p393_p6, %p387_p3 }
   0xe   :  { %397 = shalt.err (!%p394_p7)
}
   0xf   :  { %20 = dma.hbm_to_vmem [thread:$0]  %s505_s0, 128, %s18_s19, [#allocation3]  }
  0x10   :  { %398 = dma.done.wait [#allocation3], 128  }
  0x11   :  { %399 = vsyncadd [#allocation3], 4294967168  ;;  %v401_v0 = vmov 0.0   ;;  %vm402_vm0 = vmmov 0   ;;  %v356_v1 = vld [vmem:[%s506_s1] sm:$0xff]   ;;  %v357_v2 = vld [vmem:[%s506_s1 + $0x8] sm:$0xff]  }
  0x12   :  { %313 = vmatprep.subr.bf16.mxu0 %v401_v0  ;;  %329 = vmatprep.mubr.msk.bf16.mxu0 %vm402_vm0, %v401_v0  ;;  %v358_v3 = vld [vmem:[%s506_s1 + $0x10] sm:$0xff]   ;;  %v364_v4 = vld [vmem:[%s508_s3] sm:$0xff]   ;;  %v359_v5 = vld [vmem:[%s506_s1 + $0x18] sm:$0xff]   ;;  %vm259_vm1 = vcmask 15360  }
  0x13   :  { %333 = vmatprep.subr.bf16.mxu1 %v401_v0  ;;  %349 = vmatprep.mubr.msk.bf16.mxu1 %vm402_vm0, %v401_v0  ;;  %v365_v6 = vld [vmem:[%s508_s3 + $0x8] sm:$0xff]   ;;  %v360_v7 = vld [vmem:[%s506_s1 + $0x20] sm:$0xff]   ;;  %v366_v8 = vld [vmem:[%s508_s3 + $0x10] sm:$0xff]  }
  0x14   :  { %314 = vmatpush3.bf16.msra.mxu0 %v356_v1  ;;  %334 = vmatpush3.bf16.msra.mxu1 %v364_v4  ;;  %v361_v9 = vld [vmem:[%s506_s1 + $0x28] sm:$0xff]   ;;  %v367_v10 = vld [vmem:[%s508_s3 + $0x18] sm:$0xff]   ;;  %v362_v11 = vld [vmem:[%s506_s1 + $0x30] sm:$0xff]  }
  0x15   :  { %315 = vmatprep.subr.bf16.mxu0 %v401_v0  ;;  %335 = vmatprep.subr.bf16.mxu1 %v401_v0  ;;  %v368_v12 = vld [vmem:[%s508_s3 + $0x20] sm:$0xff]   ;;  %v363_v13 = vld [vmem:[%s506_s1 + $0x38] sm:$0xff]   ;;  %v369_v15 = vld [vmem:[%s508_s3 + $0x28] sm:$0xff]  }
  0x16   :  { %v33_v14 = vld [vmem:[#allocation2] sm:$0xff]  ;;  %v370_v17 = vld [vmem:[%s508_s3 + $0x30] sm:$0xff]   ;;  %v371_v18 = vld [vmem:[%s508_s3 + $0x38] sm:$0xff]  }
  0x17   :  { %v34_v16 = vpack.c.bf16 %v33_v14, %v33_v14  ;;  %v277_v19 = vld [vmem:[%s507_s2] ss:$0 sm:$0xff] }
  0x18   :  { %316 = vmatpush3.bf16.msra.mxu0 %v357_v2  ;;  %336 = vmatpush3.bf16.msra.mxu1 %v365_v6  ;;  %v286_v27 = vld [vmem:[%s509_s4] ss:$0 sm:$0xff] }
  0x19   :  { %317 = vmatprep.subr.bf16.mxu0 %v401_v0  ;;  %337 = vmatprep.subr.bf16.mxu1 %v401_v0 }
  0x1c   :  { %318 = vmatpush3.bf16.msra.mxu0 %v358_v3  ;;  %338 = vmatpush3.bf16.msra.mxu1 %v366_v8 }
  0x1d   :  { %319 = vmatprep.subr.bf16.mxu0 %v401_v0  ;;  %339 = vmatprep.subr.bf16.mxu1 %v401_v0 }
  0x20   :  { %320 = vmatpush3.bf16.msra.mxu0 %v359_v5  ;;  %340 = vmatpush3.bf16.msra.mxu1 %v367_v10 }
  0x21   :  { %321 = vmatprep.subr.bf16.mxu0 %v401_v0  ;;  %341 = vmatprep.subr.bf16.mxu1 %v401_v0 }
  0x24   :  { %322 = vmatpush3.bf16.msra.mxu0 %v360_v7  ;;  %342 = vmatpush3.bf16.msra.mxu1 %v368_v12 }
  0x25   :  { %323 = vmatprep.subr.bf16.mxu0 %v401_v0  ;;  %343 = vmatprep.subr.bf16.mxu1 %v401_v0 }
  0x28   :  { %324 = vmatpush3.bf16.msra.mxu0 %v361_v9  ;;  %344 = vmatpush3.bf16.msra.mxu1 %v369_v15 }
  0x29   :  { %325 = vmatprep.subr.bf16.mxu0 %v401_v0  ;;  %345 = vmatprep.subr.bf16.mxu1 %v401_v0 }
  0x2c   :  { %326 = vmatpush3.bf16.msra.mxu0 %v362_v11  ;;  %346 = vmatpush3.bf16.msra.mxu1 %v370_v17 }
  0x2d   :  { %327 = vmatprep.subr.bf16.mxu0 %v401_v0  ;;  %347 = vmatprep.subr.bf16.mxu1 %v401_v0 }
  0x30   :  { %328 = vmatpush3.bf16.msra.mxu0 %v363_v13  ;;  %348 = vmatpush3.bf16.msra.mxu1 %v371_v18 }
  0x33   :  { %330 = vmatmul.mubr.bf16.vlgmr.msra.gmra.mrb[0].mxu0 %v34_v16 }
 0x106   :  { %v140_v20 = vpop.f32.mrb[0].mxu0 }
 0x107   :  { %v141_v21 = vadd.f32 %v277_v19, %v140_v20  ;;  %v331_v22 = vpop.f32.mrb[1].mxu0 }
 0x108   :  { %v143_v23 = vpop.f32.mrb[2].mxu0 }
 0x109   :  { %v146_v24 = vmax.f32 %v141_v21, 0.0  ;;  %v332_v25 = vpop.f32.mrb[3].mxu0 }
 0x10b   :  { %v147_v26 = vpack.c.bf16 %v146_v24, %v146_v24 }
 0x10d   :  { %350 = vmatmul.mubr.bf16.vlgmr.msra.gmra.mrb[0].mxu1 %v147_v26 }
 0x1e0   :  { %v253_v28 = vpop.f32.mrb[0].mxu1 }
 0x1e1   :  { %v254_v29 = vadd.f32 %v286_v27, %v253_v28  ;;  %v351_v30 = vpop.f32.mrb[1].mxu1 }
 0x1e2   :  { %v256_v31 = vpop.f32.mrb[2].mxu1 }
 0x1e3   :  { %v352_v32 = vpop.f32.mrb[3].mxu1  ;;  %v260_v33 = vsel %vm259_vm1, %v254_v29, -inf }
 0x1e4   :  { %261 = vmax.xlane.f32.xlu0 %v260_v33 }
 0x271   :  { %v262_v34 = vpop.xlane.xlu0 %261 }
 0x272   :  { %v263_v35 = vsub.f32 %v254_v29, %v262_v34 }
 0x274   :  { %v264_v36 = vmul.f32 1.442695, %v263_v35 }
 0x276   :  { %372 = vpow2.f32 %v264_v36 }
 0x280   :  { %v373_v37 = vpop.eup %372 }
 0x281   :  { %v266_v38 = vsel %vm259_vm1, %v373_v37, 0.0 }
 0x282   :  { %267 = vadd.xlane.f32.xlu0 %v266_v38 }
 0x30f   :  { %v268_v39 = vpop.xlane.xlu0 %267 }
 0x310   :  { %374 = vrcp.f32 %v268_v39 }
 0x31a   :  { %v375_v40 = vpop.eup %374 }
 0x31b   :  { %v270_v41 = vmul.f32 %v375_v40, %v373_v37 }
 0x31d   :  { %271 = vst.msk [vmem:[%s510_s5] sm:$0xff] %vm259_vm1, %v270_v41 }
 0x31e   :  { %276 = vsyncpa [#allocation3], 1 }

</bundles_post_ra>
